<compile_context>
chip_gen: v5e
topology: v5e:2x2
jax: 0.10.0
libtpu: 0.0.40
codegen_flags: <defaults>
</compile_context>

<pallas_src>
import functools

import jax
import jax.numpy as jnp
from jax import lax
from jax.experimental import pallas as pl
from jax.experimental.pallas import tpu as pltpu

OUTPUT_DIM = 8
HIDDEN_DIM = 32
N_LAYERS = 2
BATCH = 8       # >= 8 so sublanes are filled (review item 4)
SEQ_LEN = 8     # tokens decoded per fused-loop call

_N_IN = 2 + 3 * N_LAYERS + 2   # x, hidden, (wih, whh, b) per layer, wfc, bfc


# ----------------------------- single-step kernel -----------------------------

def _decoder_step_kernel(*refs):
    """refs = (x, hidden, [wih_l, whh_l, b_l]*L, wfc, bfc, hidden_out, pred).

    x      : (B, OUTPUT_DIM)
    hidden : (N_LAYERS, B, HIDDEN_DIM)
    wih_l  : (IN_l, HIDDEN_DIM)     (pre-transposed W_ih)
    whh_l  : (HIDDEN_DIM, HIDDEN_DIM)
    b_l    : (1, HIDDEN_DIM)        (b_ih + b_hh)
    wfc    : (HIDDEN_DIM, OUTPUT_DIM), bfc : (1, OUTPUT_DIM)
    """
    x_ref, h_ref = refs[0], refs[1]
    layer_refs = [(refs[2 + 3 * l], refs[3 + 3 * l], refs[4 + 3 * l])
                  for l in range(N_LAYERS)]
    wfc_ref, bfc_ref = refs[_N_IN - 2], refs[_N_IN - 1]
    hout_ref, pred_ref = refs[_N_IN], refs[_N_IN + 1]

    layer_in = x_ref[...]
    for layer, (wih, whh, b) in enumerate(layer_refs):
        # Two dots instead of concat([x, h]) @ W: no lane-axis concatenate.
        h_new = jnp.tanh(
            jnp.dot(layer_in, wih[...], preferred_element_type=jnp.float32)
            + jnp.dot(h_ref[layer], whh[...], preferred_element_type=jnp.float32)
            + b[...]
        )
        hout_ref[layer] = h_new
        layer_in = h_new

    pred_ref[...] = (
        jnp.dot(layer_in, wfc_ref[...], preferred_element_type=jnp.float32)
        + bfc_ref[...]
    )


# ------------------------ fused multi-step (decode) kernel ------------------------

def _decoder_seq_kernel(*refs):
    """Grid axis = time step t (marked "arbitrary": sequential dependency).

    refs = (x_t, hidden0, [wih_l, whh_l, b_l]*L, wfc, bfc,   # inputs
            pred_t, hidden_out,                               # outputs
            h_scratch)                                        # VMEM scratch

    x_t       : (1, B, OUTPUT_DIM)      block streamed per step via index_map
    hidden0   : (N_LAYERS, B, HIDDEN_DIM)   initial hidden (read once, t == 0)
    pred_t    : (1, B, OUTPUT_DIM)      per-step prediction block
    hidden_out: (N_LAYERS, B, HIDDEN_DIM)   final hidden (written at last step)
    h_scratch : (N_LAYERS, B, HIDDEN_DIM)   persists across grid steps
    """
    x_ref, h0_ref = refs[0], refs[1]
    layer_refs = [(refs[2 + 3 * l], refs[3 + 3 * l], refs[4 + 3 * l])
                  for l in range(N_LAYERS)]
    wfc_ref, bfc_ref = refs[_N_IN - 2], refs[_N_IN - 1]
    pred_ref, hout_ref = refs[_N_IN], refs[_N_IN + 1]
    h_scr = refs[_N_IN + 2]

    t = pl.program_id(0)

    @pl.when(t == 0)
    def _():
        h_scr[...] = h0_ref[...]

    layer_in = x_ref[0]                       # (B, OUTPUT_DIM)
    for layer, (wih, whh, b) in enumerate(layer_refs):
        h_new = jnp.tanh(
            jnp.dot(layer_in, wih[...], preferred_element_type=jnp.float32)
            + jnp.dot(h_scr[layer], whh[...], preferred_element_type=jnp.float32)
            + b[...]
        )
        h_scr[layer] = h_new
        layer_in = h_new

    pred_ref[0] = (
        jnp.dot(layer_in, wfc_ref[...], preferred_element_type=jnp.float32)
        + bfc_ref[...]
    )

    @pl.when(t == pl.num_programs(0) - 1)
    def _():
        hout_ref[...] = h_scr[...]


# --------------------------- parameter creation ---------------------------

def init_params(key):
    """nn.RNN / nn.Linear-shaped params, pre-transposed; W_ih / W_hh kept split.

    b_l = b_ih_l + b_hh_l is pre-summed (same math, one fewer add per layer).
    """
    params = {}
    bound = HIDDEN_DIM ** -0.5
    keys = jax.random.split(key, 4 * N_LAYERS + 2)
    ki = 0
    for layer in range(N_LAYERS):
        in_dim = OUTPUT_DIM if layer == 0 else HIDDEN_DIM
        wih = jax.random.uniform(keys[ki], (in_dim, HIDDEN_DIM),
                                 minval=-bound, maxval=bound, dtype=jnp.float32)
        whh = jax.random.uniform(keys[ki + 1], (HIDDEN_DIM, HIDDEN_DIM),
                                 minval=-bound, maxval=bound, dtype=jnp.float32)
        bih = jax.random.uniform(keys[ki + 2], (HIDDEN_DIM,),
                                 minval=-bound, maxval=bound, dtype=jnp.float32)
        bhh = jax.random.uniform(keys[ki + 3], (HIDDEN_DIM,),
                                 minval=-bound, maxval=bound, dtype=jnp.float32)
        ki += 4
        params[f"wih{layer}"] = wih
        params[f"whh{layer}"] = whh
        params[f"b{layer}"] = (bih + bhh).reshape(1, HIDDEN_DIM)
    params["wfc"] = jax.random.uniform(keys[ki], (HIDDEN_DIM, OUTPUT_DIM),
                                       minval=-bound, maxval=bound,
                                       dtype=jnp.float32)
    params["bfc"] = jax.random.uniform(keys[ki + 1], (OUTPUT_DIM,),
                                       minval=-bound, maxval=bound,
                                       dtype=jnp.float32).reshape(1, OUTPUT_DIM)
    return params


def _flat_inputs(params, first, hidden):
    inputs = [first, hidden]
    for layer in range(N_LAYERS):
        inputs += [params[f"wih{layer}"], params[f"whh{layer}"], params[f"b{layer}"]]
    inputs += [params["wfc"], params["bfc"]]
    return inputs


# ------------------------------ single-step forward ------------------------------

@functools.partial(jax.jit, donate_argnums=(2,))
def decoder_forward(params, x, hidden):
    """Exact module semantics: x (B, OUTPUT_DIM), hidden (L, B, H).

    Equivalent to:
        x = x.unsqueeze(1); output, hidden = rnn(x, hidden)
        prediction = fc_out(output.squeeze(0))
    `hidden` is donated and aliased in-place to the new hidden.
    """
    B = x.shape[0]
    inputs = _flat_inputs(params, x, hidden)
    vmem = pl.BlockSpec(memory_space=pltpu.MemorySpace.VMEM)

    hidden_out, pred = pl.pallas_call(
        _decoder_step_kernel,
        out_shape=(
            jax.ShapeDtypeStruct((N_LAYERS, B, HIDDEN_DIM), jnp.float32),
            jax.ShapeDtypeStruct((B, OUTPUT_DIM), jnp.float32),
        ),
        in_specs=[vmem] * len(inputs),
        out_specs=(vmem, vmem),
        input_output_aliases={1: 0},   # hidden (input 1) -> hidden_out (output 0)
    )(*inputs)

    # output.squeeze(0) only squeezes when the leading dim is 1.
    prediction = pred if B == 1 else pred.reshape(B, 1, OUTPUT_DIM)
    return prediction, hidden_out


# ------------------------- fused multi-step (decode) forward -------------------------

@jax.jit
def decoder_forward_seq(params, x_seq, hidden):
    """Run SEQ_LEN decoder steps in ONE pallas_call (teacher-forced token stream).

    x_seq: (T, B, OUTPUT_DIM), hidden: (L, B, H).
    Returns per-step predictions (T, B, OUTPUT_DIM) and the final hidden.
    Equivalent to calling the module forward once per token, carrying hidden.
    """
    T, B, _ = x_seq.shape
    inputs = _flat_inputs(params, x_seq, hidden)

    in_specs = [
        # one token block per grid step, streamed in by index_map
        pl.BlockSpec((1, B, OUTPUT_DIM), lambda t: (t, 0, 0)),
        # initial hidden: constant block -> fetched once, resident in VMEM
        pl.BlockSpec((N_LAYERS, B, HIDDEN_DIM), lambda t: (0, 0, 0)),
    ]
    for layer in range(N_LAYERS):
        in_dim = OUTPUT_DIM if layer == 0 else HIDDEN_DIM
        in_specs += [
            pl.BlockSpec((in_dim, HIDDEN_DIM), lambda t: (0, 0)),
            pl.BlockSpec((HIDDEN_DIM, HIDDEN_DIM), lambda t: (0, 0)),
            pl.BlockSpec((1, HIDDEN_DIM), lambda t: (0, 0)),
        ]
    in_specs += [
        pl.BlockSpec((HIDDEN_DIM, OUTPUT_DIM), lambda t: (0, 0)),
        pl.BlockSpec((1, OUTPUT_DIM), lambda t: (0, 0)),
    ]
    out_specs = (
        pl.BlockSpec((1, B, OUTPUT_DIM), lambda t: (t, 0, 0)),
        pl.BlockSpec((N_LAYERS, B, HIDDEN_DIM), lambda t: (0, 0, 0)),
    )

    pred_seq, hidden_out = pl.pallas_call(
        _decoder_seq_kernel,
        grid=(T,),
        out_shape=(
            jax.ShapeDtypeStruct((T, B, OUTPUT_DIM), jnp.float32),
            jax.ShapeDtypeStruct((N_LAYERS, B, HIDDEN_DIM), jnp.float32),
        ),
        in_specs=in_specs,
        out_specs=out_specs,
        scratch_shapes=[pltpu.VMEM((N_LAYERS, B, HIDDEN_DIM), jnp.float32)],
        input_output_aliases={1: 1},   # hidden (input 1) -> hidden_out (output 1)
        compiler_params=pltpu.CompilerParams(
            dimension_semantics=("arbitrary",)),   # sequential carry through h_scratch
    )(*inputs)
    return pred_seq, hidden_out

# TODO(synk): if batch grows well beyond 8, add a leading batch-tile grid axis
# marked "parallel" (v7x: shards across both TensorCores) and consider staging
# per-step predictions into one lane-dense (last-dim multiple of 128) slab.


# ------------------------------ pure-JAX references ------------------------------

def _step_math(params, x2d, hidden):
    layer_in = x2d
    new_h = []
    for layer in range(N_LAYERS):
        h_new = jnp.tanh(layer_in @ params[f"wih{layer}"]
                         + hidden[layer] @ params[f"whh{layer}"]
                         + params[f"b{layer}"])
        new_h.append(h_new)
        layer_in = h_new
    pred = layer_in @ params["wfc"] + params["bfc"]
    return pred, jnp.stack(new_h, axis=0)


def decoder_reference(params, x, hidden):
    pred, hidden_out = _step_math(params, x, hidden)
    B = x.shape[0]
    prediction = pred if B == 1 else pred.reshape(B, 1, OUTPUT_DIM)
    return prediction, hidden_out


def decoder_seq_reference(params, x_seq, hidden):
    def step(h, x_t):
        pred, h_new = _step_math(params, x_t, h)
        return h_new, pred
    h_final, preds = lax.scan(step, hidden, x_seq)
    return preds, h_final


# --------------------------------- main ------------------------------------

if __name__ == "__main__":
    key = jax.random.PRNGKey(0)
    k_param, k_x, k_h, k_seq = jax.random.split(key, 4)

    params = init_params(k_param)
    x = jax.random.normal(k_x, (BATCH, OUTPUT_DIM), dtype=jnp.float32)
    hidden = jax.random.normal(k_h, (N_LAYERS, BATCH, HIDDEN_DIM),
                               dtype=jnp.float32)
    x_seq = jax.random.normal(k_seq, (SEQ_LEN, BATCH, OUTPUT_DIM),
                              dtype=jnp.float32)

    # Pure-JAX references first (`hidden` is donated to the single-step kernel below).
    ref_pred, ref_hidden = decoder_reference(params, x, hidden)
    ref_pred_seq, ref_hidden_seq = decoder_seq_reference(params, x_seq, hidden)
    jax.block_until_ready((ref_pred, ref_hidden, ref_pred_seq, ref_hidden_seq))

    # Fused multi-step decode: one pallas_call for all SEQ_LEN tokens.
    pred_seq, hidden_seq = decoder_forward_seq(params, x_seq, hidden)
    jax.block_until_ready((pred_seq, hidden_seq))

    # Single-step forward (exact module semantics). Donates `hidden` -> last use.
    prediction, new_hidden = decoder_forward(params, x, hidden)
    jax.block_until_ready((prediction, new_hidden))

    assert prediction.shape == (BATCH, 1, OUTPUT_DIM)
    assert new_hidden.shape == (N_LAYERS, BATCH, HIDDEN_DIM)
    assert pred_seq.shape == (SEQ_LEN, BATCH, OUTPUT_DIM)
    assert hidden_seq.shape == (N_LAYERS, BATCH, HIDDEN_DIM)

    assert jnp.allclose(prediction, ref_pred, atol=1e-3, rtol=1e-3)
    assert jnp.allclose(new_hidden, ref_hidden, atol=1e-3, rtol=1e-3)
    assert jnp.allclose(pred_seq, ref_pred_seq, atol=1e-3, rtol=1e-3)
    assert jnp.allclose(hidden_seq, ref_hidden_seq, atol=1e-3, rtol=1e-3)

    print("KERNEL_OK")
</pallas_src>

<mosaic_0001>
module attributes {stable_mosaic.version = 11 : i64} {
  func.func @_decoder_seq_kernel(%arg0: i32, %arg1: memref<1x8x8xf32, #tpu.memory_space<vmem>>, %arg2: memref<2x8x32xf32, #tpu.memory_space<vmem>>, %arg3: memref<8x32xf32, #tpu.memory_space<vmem>>, %arg4: memref<32x32xf32, #tpu.memory_space<vmem>>, %arg5: memref<1x32xf32, #tpu.memory_space<vmem>>, %arg6: memref<32x32xf32, #tpu.memory_space<vmem>>, %arg7: memref<32x32xf32, #tpu.memory_space<vmem>>, %arg8: memref<1x32xf32, #tpu.memory_space<vmem>>, %arg9: memref<32x8xf32, #tpu.memory_space<vmem>>, %arg10: memref<1x8xf32, #tpu.memory_space<vmem>>, %arg11: memref<1x8x8xf32, #tpu.memory_space<vmem>>, %arg12: memref<2x8x32xf32, #tpu.memory_space<vmem>>, %arg13: memref<2x8x32xf32, #tpu.memory_space<vmem>>) attributes {dimension_semantics = [#tpu.dimension_semantics<arbitrary>], iteration_bounds = array<i64: 8>, scalar_prefetch = 0 : i64, scratch_operands = 1 : i64, tpu.core_type = #tpu.core_type<tc>, window_params = [{transform_indices = @transform_0, window_bounds = array<i64: 1, 8, 8>}, {pipeline_mode = #tpu.pipeline_mode<synchronous>, transform_indices = @transform_1, window_bounds = array<i64: 2, 8, 32>}, {pipeline_mode = #tpu.pipeline_mode<synchronous>, transform_indices = @transform_2, window_bounds = array<i64: 8, 32>}, {pipeline_mode = #tpu.pipeline_mode<synchronous>, transform_indices = @transform_3, window_bounds = array<i64: 32, 32>}, {pipeline_mode = #tpu.pipeline_mode<synchronous>, transform_indices = @transform_4, window_bounds = array<i64: 1, 32>}, {pipeline_mode = #tpu.pipeline_mode<synchronous>, transform_indices = @transform_5, window_bounds = array<i64: 32, 32>}, {pipeline_mode = #tpu.pipeline_mode<synchronous>, transform_indices = @transform_6, window_bounds = array<i64: 32, 32>}, {pipeline_mode = #tpu.pipeline_mode<synchronous>, transform_indices = @transform_7, window_bounds = array<i64: 1, 32>}, {pipeline_mode = #tpu.pipeline_mode<synchronous>, transform_indices = @transform_8, window_bounds = array<i64: 32, 8>}, {pipeline_mode = #tpu.pipeline_mode<synchronous>, transform_indices = @transform_9, window_bounds = array<i64: 1, 8>}, {transform_indices = @transform_10, window_bounds = array<i64: 1, 8, 8>}, {pipeline_mode = #tpu.pipeline_mode<synchronous>, transform_indices = @transform_11, window_bounds = array<i64: 2, 8, 32>}]} {
    %c0_i32 = arith.constant 0 : i32
    %0 = arith.cmpi eq, %arg0, %c0_i32 : i32
    %1 = arith.extui %0 : i1 to i32
    %c0_i32_0 = arith.constant 0 : i32
    %2 = arith.cmpi ne, %1, %c0_i32_0 : i32
    scf.if %2 {
      %c0_38 = arith.constant 0 : index
      %c0_39 = arith.constant 0 : index
      %c0_40 = arith.constant 0 : index
      %44 = vector.load %arg2[%c0_38, %c0_39, %c0_40] : memref<2x8x32xf32, #tpu.memory_space<vmem>>, vector<2x8x32xf32>
      %c0_41 = arith.constant 0 : index
      %c0_42 = arith.constant 0 : index
      %c0_43 = arith.constant 0 : index
      %45 = vector.load %arg13[%c0_41, %c0_42, %c0_43] : memref<2x8x32xf32, #tpu.memory_space<vmem>>, vector<2x8x32xf32>
      tpu.vector_store %arg13[%c0_41, %c0_42, %c0_43], %44 {strides = array<i32>} : memref<2x8x32xf32, #tpu.memory_space<vmem>>, vector<2x8x32xf32>,
    } else {
    }
    %c0 = arith.constant 0 : index
    %c0_1 = arith.constant 0 : index
    %c0_2 = arith.constant 0 : index
    %3 = vector.load %arg1[%c0, %c0_1, %c0_2] : memref<1x8x8xf32, #tpu.memory_space<vmem>>, vector<1x8x8xf32>
    %4 = vector.shape_cast %3 : vector<1x8x8xf32> to vector<8x8xf32>
    %c0_3 = arith.constant 0 : index
    %c0_4 = arith.constant 0 : index
    %5 = vector.load %arg3[%c0_3, %c0_4] : memref<8x32xf32, #tpu.memory_space<vmem>>, vector<8x32xf32>
    %cst = arith.constant dense<0.000000e+00> : vector<8x32xf32>
    %6 = tpu.matmul %4, %5, %cst {dimension_numbers = #tpu.dot_dimension_numbers<[1], [0], [0], [1], [0, 0, 1, 1], [], []>} : vector<8x8xf32>, vector<8x32xf32>, vector<8x32xf32> -> vector<8x32xf32>
    %c0_5 = arith.constant 0 : index
    %c0_6 = arith.constant 0 : index
    %c0_7 = arith.constant 0 : index
    %7 = vector.load %arg13[%c0_5, %c0_6, %c0_7] : memref<2x8x32xf32, #tpu.memory_space<vmem>>, vector<1x8x32xf32>
    %8 = vector.shape_cast %7 : vector<1x8x32xf32> to vector<8x32xf32>
    %c0_8 = arith.constant 0 : index
    %c0_9 = arith.constant 0 : index
    %9 = vector.load %arg4[%c0_8, %c0_9] : memref<32x32xf32, #tpu.memory_space<vmem>>, vector<32x32xf32>
    %cst_10 = arith.constant dense<0.000000e+00> : vector<8x32xf32>
    %10 = tpu.matmul %8, %9, %cst_10 {dimension_numbers = #tpu.dot_dimension_numbers<[1], [0], [0], [1], [0, 0, 1, 1], [], []>} : vector<8x32xf32>, vector<32x32xf32>, vector<8x32xf32> -> vector<8x32xf32>
    %11 = arith.addf %6, %10 : vector<8x32xf32>
    %c0_11 = arith.constant 0 : index
    %c0_12 = arith.constant 0 : index
    %12 = vector.load %arg5[%c0_11, %c0_12] : memref<1x32xf32, #tpu.memory_space<vmem>>, vector<1x32xf32>
    %13 = vector.broadcast %12 : vector<1x32xf32> to vector<8x32xf32>
    %14 = arith.addf %11, %13 : vector<8x32xf32>
    %15 = math.tanh %14 : vector<8x32xf32>
    %c0_13 = arith.constant 0 : index
    %c0_14 = arith.constant 0 : index
    %c0_15 = arith.constant 0 : index
    %16 = vector.load %arg13[%c0_13, %c0_14, %c0_15] : memref<2x8x32xf32, #tpu.memory_space<vmem>>, vector<1x8x32xf32>
    %17 = vector.shape_cast %16 : vector<1x8x32xf32> to vector<8x32xf32>
    %18 = vector.shape_cast %15 : vector<8x32xf32> to vector<1x8x32xf32>
    tpu.vector_store %arg13[%c0_13, %c0_14, %c0_15], %18 {strides = array<i32>} : memref<2x8x32xf32, #tpu.memory_space<vmem>>, vector<1x8x32xf32>,
    %c0_16 = arith.constant 0 : index
    %c0_17 = arith.constant 0 : index
    %19 = vector.load %arg6[%c0_16, %c0_17] : memref<32x32xf32, #tpu.memory_space<vmem>>, vector<32x32xf32>
    %cst_18 = arith.constant dense<0.000000e+00> : vector<8x32xf32>
    %20 = tpu.matmul %15, %19, %cst_18 {dimension_numbers = #tpu.dot_dimension_numbers<[1], [0], [0], [1], [0, 0, 1, 1], [], []>} : vector<8x32xf32>, vector<32x32xf32>, vector<8x32xf32> -> vector<8x32xf32>
    %c1 = arith.constant 1 : index
    %c0_19 = arith.constant 0 : index
    %c0_20 = arith.constant 0 : index
    %21 = vector.load %arg13[%c1, %c0_19, %c0_20] : memref<2x8x32xf32, #tpu.memory_space<vmem>>, vector<1x8x32xf32>
    %22 = vector.shape_cast %21 : vector<1x8x32xf32> to vector<8x32xf32>
    %c0_21 = arith.constant 0 : index
    %c0_22 = arith.constant 0 : index
    %23 = vector.load %arg7[%c0_21, %c0_22] : memref<32x32xf32, #tpu.memory_space<vmem>>, vector<32x32xf32>
    %cst_23 = arith.constant dense<0.000000e+00> : vector<8x32xf32>
    %24 = tpu.matmul %22, %23, %cst_23 {dimension_numbers = #tpu.dot_dimension_numbers<[1], [0], [0], [1], [0, 0, 1, 1], [], []>} : vector<8x32xf32>, vector<32x32xf32>, vector<8x32xf32> -> vector<8x32xf32>
    %25 = arith.addf %20, %24 : vector<8x32xf32>
    %c0_24 = arith.constant 0 : index
    %c0_25 = arith.constant 0 : index
    %26 = vector.load %arg8[%c0_24, %c0_25] : memref<1x32xf32, #tpu.memory_space<vmem>>, vector<1x32xf32>
    %27 = vector.broadcast %26 : vector<1x32xf32> to vector<8x32xf32>
    %28 = arith.addf %25, %27 : vector<8x32xf32>
    %29 = math.tanh %28 : vector<8x32xf32>
    %c1_26 = arith.constant 1 : index
    %c0_27 = arith.constant 0 : index
    %c0_28 = arith.constant 0 : index
    %30 = vector.load %arg13[%c1_26, %c0_27, %c0_28] : memref<2x8x32xf32, #tpu.memory_space<vmem>>, vector<1x8x32xf32>
    %31 = vector.shape_cast %30 : vector<1x8x32xf32> to vector<8x32xf32>
    %32 = vector.shape_cast %29 : vector<8x32xf32> to vector<1x8x32xf32>
    tpu.vector_store %arg13[%c1_26, %c0_27, %c0_28], %32 {strides = array<i32>} : memref<2x8x32xf32, #tpu.memory_space<vmem>>, vector<1x8x32xf32>,
    %c0_29 = arith.constant 0 : index
    %c0_30 = arith.constant 0 : index
    %33 = vector.load %arg9[%c0_29, %c0_30] : memref<32x8xf32, #tpu.memory_space<vmem>>, vector<32x8xf32>
    %cst_31 = arith.constant dense<0.000000e+00> : vector<8x8xf32>
    %34 = tpu.matmul %29, %33, %cst_31 {dimension_numbers = #tpu.dot_dimension_numbers<[1], [0], [0], [1], [0, 0, 1, 1], [], []>} : vector<8x32xf32>, vector<32x8xf32>, vector<8x8xf32> -> vector<8x8xf32>
    %c0_32 = arith.constant 0 : index
    %c0_33 = arith.constant 0 : index
    %35 = vector.load %arg10[%c0_32, %c0_33] : memref<1x8xf32, #tpu.memory_space<vmem>>, vector<1x8xf32>
    %36 = vector.broadcast %35 : vector<1x8xf32> to vector<8x8xf32>
    %37 = arith.addf %34, %36 : vector<8x8xf32>
    %c0_34 = arith.constant 0 : index
    %c0_35 = arith.constant 0 : index
    %c0_36 = arith.constant 0 : index
    %38 = vector.load %arg11[%c0_34, %c0_35, %c0_36] : memref<1x8x8xf32, #tpu.memory_space<vmem>>, vector<1x8x8xf32>
    %39 = vector.shape_cast %38 : vector<1x8x8xf32> to vector<8x8xf32>
    %40 = vector.shape_cast %37 : vector<8x8xf32> to vector<1x8x8xf32>
    tpu.vector_store %arg11[%c0_34, %c0_35, %c0_36], %40 {strides = array<i32>} : memref<1x8x8xf32, #tpu.memory_space<vmem>>, vector<1x8x8xf32>,
    %c7_i32 = arith.constant 7 : i32
    %41 = arith.cmpi eq, %arg0, %c7_i32 : i32
    %42 = arith.extui %41 : i1 to i32
    %c0_i32_37 = arith.constant 0 : i32
    %43 = arith.cmpi ne, %42, %c0_i32_37 : i32
    scf.if %43 {
      %c0_38 = arith.constant 0 : index
      %c0_39 = arith.constant 0 : index
      %c0_40 = arith.constant 0 : index
      %44 = vector.load %arg13[%c0_38, %c0_39, %c0_40] : memref<2x8x32xf32, #tpu.memory_space<vmem>>, vector<2x8x32xf32>
      %c0_41 = arith.constant 0 : index
      %c0_42 = arith.constant 0 : index
      %c0_43 = arith.constant 0 : index
      %45 = vector.load %arg12[%c0_41, %c0_42, %c0_43] : memref<2x8x32xf32, #tpu.memory_space<vmem>>, vector<2x8x32xf32>
      tpu.vector_store %arg12[%c0_41, %c0_42, %c0_43], %44 {strides = array<i32>} : memref<2x8x32xf32, #tpu.memory_space<vmem>>, vector<2x8x32xf32>,
    } else {
    }
    return
  }
  func.func @transform_0(%arg0: i32) -> (i32, i32, i32) {
    %c0_i32 = arith.constant 0 : i32
    %c0_i32_0 = arith.constant 0 : i32
    %c0_i32_1 = arith.constant 0 : i32
    return %arg0, %c0_i32, %c0_i32_0 : i32, i32, i32
  }
  func.func @transform_1(%arg0: i32) -> (i32, i32, i32) {
    %c0_i32 = arith.constant 0 : i32
    %c0_i32_0 = arith.constant 0 : i32
    %c0_i32_1 = arith.constant 0 : i32
    %c0_i32_2 = arith.constant 0 : i32
    return %c0_i32, %c0_i32_0, %c0_i32_1 : i32, i32, i32
  }
  func.func @transform_2(%arg0: i32) -> (i32, i32) {
    %c0_i32 = arith.constant 0 : i32
    %c0_i32_0 = arith.constant 0 : i32
    %c0_i32_1 = arith.constant 0 : i32
    return %c0_i32, %c0_i32_0 : i32, i32
  }
  func.func @transform_3(%arg0: i32) -> (i32, i32) {
    %c0_i32 = arith.constant 0 : i32
    %c0_i32_0 = arith.constant 0 : i32
    %c0_i32_1 = arith.constant 0 : i32
    return %c0_i32, %c0_i32_0 : i32, i32
  }
  func.func @transform_4(%arg0: i32) -> (i32, i32) {
    %c0_i32 = arith.constant 0 : i32
    %c0_i32_0 = arith.constant 0 : i32
    %c0_i32_1 = arith.constant 0 : i32
    return %c0_i32, %c0_i32_0 : i32, i32
  }
  func.func @transform_5(%arg0: i32) -> (i32, i32) {
    %c0_i32 = arith.constant 0 : i32
    %c0_i32_0 = arith.constant 0 : i32
    %c0_i32_1 = arith.constant 0 : i32
    return %c0_i32, %c0_i32_0 : i32, i32
  }
  func.func @transform_6(%arg0: i32) -> (i32, i32) {
    %c0_i32 = arith.constant 0 : i32
    %c0_i32_0 = arith.constant 0 : i32
    %c0_i32_1 = arith.constant 0 : i32
    return %c0_i32, %c0_i32_0 : i32, i32
  }
  func.func @transform_7(%arg0: i32) -> (i32, i32) {
    %c0_i32 = arith.constant 0 : i32
    %c0_i32_0 = arith.constant 0 : i32
    %c0_i32_1 = arith.constant 0 : i32
    return %c0_i32, %c0_i32_0 : i32, i32
  }
  func.func @transform_8(%arg0: i32) -> (i32, i32) {
    %c0_i32 = arith.constant 0 : i32
    %c0_i32_0 = arith.constant 0 : i32
    %c0_i32_1 = arith.constant 0 : i32
    return %c0_i32, %c0_i32_0 : i32, i32
  }
  func.func @transform_9(%arg0: i32) -> (i32, i32) {
    %c0_i32 = arith.constant 0 : i32
    %c0_i32_0 = arith.constant 0 : i32
    %c0_i32_1 = arith.constant 0 : i32
    return %c0_i32, %c0_i32_0 : i32, i32
  }
  func.func @transform_10(%arg0: i32) -> (i32, i32, i32) {
    %c0_i32 = arith.constant 0 : i32
    %c0_i32_0 = arith.constant 0 : i32
    %c0_i32_1 = arith.constant 0 : i32
    return %arg0, %c0_i32, %c0_i32_0 : i32, i32, i32
  }
  func.func @transform_11(%arg0: i32) -> (i32, i32, i32) {
    %c0_i32 = arith.constant 0 : i32
    %c0_i32_0 = arith.constant 0 : i32
    %c0_i32_1 = arith.constant 0 : i32
    %c0_i32_2 = arith.constant 0 : i32
    return %c0_i32, %c0_i32_0, %c0_i32_1 : i32, i32, i32
  }
}

</mosaic_0001>

<bundles_post_ra>
// kernel: decoder_forward_seq.1
= control target key start
LH: loop header
LB: loop body
LE: loop exit
PB: predicated region body
PF: predicated region fallthrough
CT: control target
= control target key end

     0   :  { %s1446_s0 = inlined_call_operand.vmem [shape: f32[8,8,8], index: 0, kind: input, shape index: {}]   ;;  %s1447_s1 = inlined_call_operand.hbm [shape: f32[2,8,32], index: 1, kind: input, shape index: {}, may-alias: {1,11}]   ;;  %s1448_s2 = inlined_call_operand.hbm [shape: f32[8,32], index: 2, kind: input, shape index: {}]   ;;  %s1449_s3 = inlined_call_operand.hbm [shape: f32[32,32], index: 3, kind: input, shape index: {}]   ;;  %s1450_s4 = inlined_call_operand.vmem [shape: f32[1,32], index: 4, kind: input, shape index: {}]   ;;  %s1451_s5 = inlined_call_operand.hbm [shape: f32[32,32], index: 5, kind: input, shape index: {}]   ;;  %s1452_s6 = inlined_call_operand.hbm [shape: f32[32,32], index: 6, kind: input, shape index: {}]   ;;  %s1453_s7 = inlined_call_operand.vmem [shape: f32[1,32], index: 7, kind: input, shape index: {}]   ;;  %s1454_s8 = inlined_call_operand.vmem [shape: f32[32,8], index: 8, kind: input, shape index: {}]   ;;  %s1455_s9 = inlined_call_operand.vmem [shape: f32[1,8], index: 9, kind: input, shape index: {}]   ;;  %s1456_s10 = inlined_call_operand.hbm [shape: f32[8,8,8], index: 10, kind: output, shape index: {0}]   ;;  %s1457_s11 = inlined_call_operand.hbm [shape: f32[2,8,32], index: 11, kind: output, shape index: {1}, may-alias: {1,11}]  }
   0x1   :  { %1462 = sst [smem:[#allocation24_spill]] %s1447_s1 }
   0x2   :  { %1463 = sst [smem:[#allocation25_spill]] %s1448_s2 }
   0x3   :  { %1464 = sst [smem:[#allocation26_spill]] %s1451_s5 }
   0x4   :  { %17 = vsyncpa [#allocation4], 0 }
   0x5   :  { %18 = vsyncpa [#allocation7], 0 }
   0x6   :  { %19 = vsyncpa [#allocation10], 0 }
   0x7   :  { %20 = vsyncpa [#allocation5], 0 }
   0x8   :  { %22 = vsyncpa [#allocation5 + $0x1], 0 }
   0x9   :  { %23 = vsyncpa [#allocation14], 0  ;;  %s1252_s17 = smov 0   ;;  %s1254_s18 = smov 0  }
   0xa   :  { %s1256_s19 = smov 0   ;;  %s1258_s20 = smov 0  }
   0xb LB: > { %1465 = sst [smem:[#allocation20_spill]] %s1176_s19  ;;  %s1273_s21 = sadd.s32 4294967295, %s1180_s20   ;;  %s1180_s20 = sphi %s1258_s20, %s1477_s20   ;;  %s1176_s19 = sphi %s1256_s19, %s1479_s19   ;;  %s1172_s18 = sphi %s1254_s18, %s1481_s18   ;;  %s1168_s17 = sphi %s1252_s17, %s1480_s17  }
   0xc   : > { %s787_s22 = sadd.s32 4294967294, %s1180_s20   ;;  %s1277_s23 = sadd.s32 1, %s1180_s20  }
   0xd   : > { %1466 = sst [smem:[#allocation21_spill]] %s1277_s23  ;;  %s251_s24 = sadd.s32 1, %s1176_s19 }
   0xe   : > { %s248_s25 = ssub.s32 %s1180_s20, %s1277_s23  ;;  %p261_p0 = scmp.ne.s32.totalorder %s1176_s19, %s1172_s18 }
   0xf   : > { %p249_p1 = scmp.eq.s32.totalorder %s248_s25, 0  ;;  %p262_p2 = scmp.eq.s32.totalorder %s1273_s21, 7 }
  0x10   : > { %p267_p3 = scmp.ne.s32.totalorder %s1172_s18, %s1168_s17  ;;  %p268_p4 = scmp.eq.s32.totalorder %s787_s22, 7 }
  0x11   : > { %s1288_s26 = scalar_select %p249_p1, %s1176_s19, %s251_s24  }
  0x12   : > { %p1292_p5 = por %p262_p2, %p261_p0  ;;  %p1296_p6 = por %p268_p4, %p267_p3 }
  0x13   : > { %1467 = sst [smem:[#allocation22_spill]] %s1288_s26  ;;  %p788_p7 = scmp.ge.s32.totalorder %s1180_s20, 1 }
  0x14   : > { %s1469_s28 = scalar_select %p1296_p6, 1, 0 }
  0x15   : > { %p296_p8 = scmp.lt.s32.totalorder %s1180_s20, 9  ;;  %p789_p9 = scmp.ne.s32.totalorder %s1273_s21, 0 }
  0x16   : > { %1470 = sst [smem:[#allocation23_spill]] %s1469_s28  ;;  %p862_p10 = scmp.eq.s32.totalorder %s1273_s21, 0 }
  0x17   : > { %p1304_p11 = pnand %p788_p7, %p296_p8  ;;  %s1472_s2 = sld [smem:[#allocation25_spill]] }
  0x18   : > { %s1182_s14 = smov [#allocation6]   ;;  %s1474_s5 = sld [smem:[#allocation26_spill]] }
  0x19   : > { %p842_p12 = pneg %p1304_p11  ;;  %s324_s15 = sshll.u32 %s1182_s14, 4  ;;  %s325_s15 = int_to_ptr.vmem [resolvable:$true] %s324_s15 }
  0x1a   : > { %s1183_s30 = smov [#allocation9]   ;;  %s1475_s1 = sld [smem:[#allocation24_spill]] }
  0x1b   : > { %p1315_p13 = pnand %p862_p10, %p842_p12  ;;  %s352_s12 = sshll.u32 %s1183_s30, 4  ;;  %s353_s12 = int_to_ptr.vmem [resolvable:$true] %s352_s12 }
  0x1c   : > { %s1184_s19 = smov 128   ;;  %s1185_s23 = smov 8  }
  0x1d   : > { %s322_s13 = sshll.u32 %s1472_s2, 4  ;;  %s1186_s28 = smov [#allocation3]   ;;  %s323_s13 = int_to_ptr.hbm [resolvable:$true] %s322_s13 }
  0x1e   : > { %s350_s25 = sshll.u32 %s1474_s5, 4  ;;  %s333_s5 = sshll.u32 %s1449_s3, 4  ;;  %s351_s25 = int_to_ptr.hbm [resolvable:$true] %s350_s25  ;;  %s334_s5 = int_to_ptr.hbm [resolvable:$true] %s333_s5 }
  0x1f   : > { %848 = dma.hbm_to_vmem [thread:$0]  (!%p1315_p13), %s323_s13, 128, %s325_s15, [#allocation7]  }
  0x20   : > { %s307_s26 = sshll.u32 %s1475_s1, 4  ;;  %s309_s13 = sshll.u32 %s1186_s28, 4  ;;  %s308_s26 = int_to_ptr.hbm [resolvable:$true] %s307_s26  ;;  %s310_s13 = int_to_ptr.vmem [resolvable:$true] %s309_s13 }
  0x21   : > { %854 = dma.hbm_to_vmem [thread:$0]  (!%p1315_p13), %s351_s25, 512, %s353_s12, [#allocation10], %s1184_s19, %s1184_s19, %s1185_s23  }
  0x22   : > { %845 = dma.hbm_to_vmem [thread:$0]  (!%p1315_p13), %s308_s26, 256, %s310_s13, [#allocation4], %s1184_s19, %s1184_s19, %s1185_s23  }
  0x23   : > { %s1187_s2 = smov [#allocation8]   ;;  %s364_s1 = sshll.u32 %s1452_s6, 4  ;;  %s365_s1 = int_to_ptr.hbm [resolvable:$true] %s364_s1 }
  0x24   : > { %s335_s15 = sshll.u32 %s1187_s2, 4  ;;  %s1188_s25 = smov [#allocation11]   ;;  %s336_s15 = int_to_ptr.vmem [resolvable:$true] %s335_s15 }
  0x25   : > { %851 = dma.hbm_to_vmem [thread:$0]  (!%p1315_p13), %s334_s5, 512, %s336_s15, [#allocation7], %s1184_s19, %s1184_s19, %s1185_s23  }
  0x26   : > { %s366_s12 = sshll.u32 %s1188_s25, 4  ;;  %398 = sbr.rel (%p1304_p11) target bundleno = 498 (0x1f2), region = 60  ;;  %s367_s12 = int_to_ptr.vmem [resolvable:$true] %s366_s12 }
  0x27   : > { %857 = dma.hbm_to_vmem [thread:$0]  (!%p1315_p13), %s365_s1, 512, %s367_s12, [#allocation10], %s1184_s19, %s1184_s19, %s1185_s23  }
  0x2b   : > { %1147 = dma.done.wait (%p862_p10), [#allocation4], 256  }
  0x2c   : > { %1149 = vsyncadd (%p862_p10), [#allocation4], 4294967040 }
  0x2d   : > { %1151 = dma.done.wait (%p862_p10), [#allocation7], 640  }
  0x2e   : > { %1153 = vsyncadd (%p862_p10), [#allocation7], 4294966656 }
  0x2f   : > { %1155 = dma.done.wait (%p862_p10), [#allocation10], 1024  }
  0x30   : > { %1157 = vsyncadd (%p862_p10), [#allocation10], 4294966272  ;;  %s453_s1 = sand.u32 1, %s1172_s18   ;;  %p458_p0 = scmp.lt.s32.totalorder %s1273_s21, 7 }
  0x31   : > { %s1359_s5 = sshll.u32 %s453_s1, 3  ;;  %465 = sbr.rel (%p789_p9) target bundleno = 57 (0x39), region = 84 }
  0x32   : > { %s459_s19 = scalar_select %p458_p0, %s1273_s21, 7 }
  0x33   : > { %s455_s16 = scalar_lea.vmem [#allocation12], %s1359_s5 }
  0x34   : > { %s802_s23 = sshll.u32 %s459_s19, 3 }
  0x35   : > { %s461_s29 = scalar_lea.vmem %s1446_s0, %s802_s23 }
  0x36   : > { %v466_v0 = vld [vmem:[#allocation3] sm:$0xff]  ;;  %vm468_vm0 = vcmask 261120   ;;  %v467_v1 = vld [vmem:[#allocation3 + $0x8] sm:$0xff] }
  0x37   : > { %469 = vst.msk [vmem:[#allocation2] sm:$0xff] %vm468_vm0, %v466_v0 }
  0x38   : > { %470 = vst.msk [vmem:[#allocation2 + $0x8] sm:$0xff] %vm468_vm0, %v467_v1 }
  0x39 PF: > { %v477_v2 = vld [vmem:[#allocation8 + $0x18] sm:$0xff]  ;;  %v476_v3 = vld [vmem:[#allocation8 + $0x10] sm:$0xff]  ;;  %vm502_vm1 = vcmask 64512   ;;  %v475_v4 = vld [vmem:[#allocation8 + $0x8] sm:$0xff]  ;;  %vm478_vm2 = vcmask 261120   ;;  %p809_p1 = scmp.ne.s32.totalorder %s1273_s21, 7 }
  0x3a   : > { %494 = vmatpush.msra.mxu0 %v477_v2  ;;  %v472_v5 = vld [vmem:[#allocation6] sm:$0xff]  ;;  %v474_v7 = vld [vmem:[#allocation8] sm:$0xff]  ;;  %v541_v11 = vld [vmem:[#allocation11 + $0x10] sm:$0xff] }
  0x3b   : > { %521 = vmatpush.msra.mxu1 %v472_v5  ;;  %v471_v6 = vld [vmem:[%s461_s29] sm:$0xff]  ;;  %v535_v12 = vld [vmem:[#allocation9 + $0x10] sm:$0xff]  ;;  %v540_v13 = vld [vmem:[#allocation11 + $0x8] sm:$0xff] }
  0x3c   : > { %495 = vmatpush.msra.mxu0 %v476_v3  ;;  %805 = vmatmul.msk.f32.vlgmr.msra.gmra.mxu1 %vm502_vm1, %v471_v6  ;;  %v542_v9 = vld [vmem:[#allocation11 + $0x18] sm:$0xff]  ;;  %v534_v14 = vld [vmem:[#allocation9 + $0x8] sm:$0xff]  ;;  %v539_v15 = vld [vmem:[#allocation11] sm:$0xff] }
  0x3d   : > { %v536_v10 = vld [vmem:[#allocation9 + $0x18] sm:$0xff]  ;;  %558 = vmatpush.msra.mxu2 %v542_v9  ;;  %v533_v16 = vld [vmem:[#allocation9] sm:$0xff]  ;;  %v599_v24 = vld [vmem:[%s1454_s8 + $0x18] sm:$0xff] }
  0x3e   : > { %496 = vmatpush.msra.mxu0 %v475_v4  ;;  %v473_v8 = vld [vmem:[#allocation2] sm:$0xff]  ;;  %581 = vmatpush.msra.mxu3 %v536_v10  ;;  %v598_v25 = vld [vmem:[%s1454_s8 + $0x10] sm:$0xff]  ;;  %v597_v26 = vld [vmem:[%s1454_s8 + $0x8] sm:$0xff] }
  0x3f   : > { %559 = vmatpush.msra.mxu2 %v541_v11  ;;  %v538_v17 = vld [vmem:[#allocation2 + $0x8] sm:$0xff]  ;;  %v917_v19 = vld [vmem:[%s1450_s4] ss:$0 sm:$0xff]  ;;  %619 = vmatpush.msrb.mxu1 %v599_v24 }
  0x40   : > { %497 = vmatpush.msra.mxu0 %v474_v7  ;;  %582 = vmatpush.msra.mxu3 %v535_v12  ;;  %v596_v27 = vld [vmem:[%s1454_s8] sm:$0xff] }
  0x41   : > { %804 = vmatmul.msk.f32.vlgmr.msra.gmra.mxu0 %vm478_vm2, %v473_v8  ;;  %560 = vmatpush.msra.mxu2 %v540_v13  ;;  %v918_v29 = vld [vmem:[%s1453_s7] ss:$0 sm:$0xff] }
  0x42   : > { %583 = vmatpush.msra.mxu3 %v534_v14  ;;  %620 = vmatpush.msrb.mxu1 %v598_v25  ;;  %v919_v34 = vld [vmem:[%s1455_s9] ss:$0 sm:$0xff] }
  0x43   : > { %561 = vmatpush.msra.mxu2 %v539_v15 }
  0x44   : > { %584 = vmatpush.msra.mxu3 %v533_v16  ;;  %806 = vmatmul.msk.f32.vlgmr.msra.gmra.mxu2 %vm478_vm2, %v538_v17 }
  0x45   : > { %621 = vmatpush.msrb.mxu1 %v597_v26 }
  0x47   : > { %622 = vmatpush.msrb.mxu1 %v596_v27 }
  0xb9   : > { %v523_v18 = vpop.f32.mrf.mxu1 }
  0xbe   : > { %v499_v20 = vpop.f32.mrf.mxu0 }
  0xbf   : > { %v524_v21 = vadd.f32 %v523_v18, %v499_v20 }
  0xc1   : > { %v530_v22 = vadd.f32 %v917_v19, %v524_v21 }
  0xc3   : > { %920 = vtanh.f32 %v530_v22 }
  0xc7   : > { %v563_v28 = vpop.f32.mrf.mxu2 }
  0xc9   : > { %v921_v23 = vpop.eup %920 }
  0xca   : > { %532 = vst.msk [vmem:[#allocation2] sm:$0xff] %vm478_vm2, %v921_v23  ;;  %807 = vmatmul.msk.f32.vlgmr.msra.gmra.mxu3 %vm478_vm2, %v921_v23 }
 0x14d   : > { %v586_v30 = vpop.f32.mrf.mxu3 }
 0x14e   : > { %v587_v31 = vadd.f32 %v586_v30, %v563_v28 }
 0x150   : > { %v593_v32 = vadd.f32 %v918_v29, %v587_v31 }
 0x152   : > { %922 = vtanh.f32 %v593_v32 }
 0x158   : > { %v923_v33 = vpop.eup %922 }
 0x159   : > { %595 = vst.msk [vmem:[#allocation2 + $0x8] sm:$0xff] %vm478_vm2, %v923_v33  ;;  %808 = vmatmul.msk.f32.vlgmr.msrb.gmra.mxu1 %vm478_vm2, %v923_v33 }
 0x1d5   : > { %631 = sbr.rel (%p809_p1) target bundleno = 477 (0x1dd), region = 88 }
 0x1d6   : > { %v624_v35 = vpop.f32.mrf.mxu1 }
 0x1d7   : > { %v625_v36 = vadd.f32 %v919_v34, %v624_v35 }
 0x1d9   : > { %627 = vst.msk [vmem:[%s455_s16] sm:$0xff] %vm502_vm1, %v625_v36 }
 0x1da   : > { %v632_v37 = vld [vmem:[#allocation2] sm:$0xff]  ;;  %v633_v38 = vld [vmem:[#allocation2 + $0x8] sm:$0xff] }
 0x1db   : > { %634 = vst.msk [vmem:[#allocation13] sm:$0xff] %vm478_vm2, %v632_v37 }
 0x1dc   : > { %635 = vst.msk [vmem:[#allocation13 + $0x8] sm:$0xff] %vm478_vm2, %v633_v38 }
 0x1dd PF: > { %s811_s22 = sshll.u32 %s1273_s21, 3  ;;  %s649_s15 = sshll.u32 %s455_s16, 4  ;;  %s650_s15 = int_to_ptr.vmem [resolvable:$true] %s649_s15 }
 0x1de   : > { %s647_s2 = scalar_lea.hbm %s1456_s10, %s811_s22  ;;  %s637_s14 = scalar_lea.sflag [#allocation5], %s453_s1 }
 0x1df   : > { %s651_s30 = sshll.u32 %s647_s2, 4  ;;  %s1094_s26 = scalar_lea.hbm %s1456_s10, 64  ;;  %s652_s30 = int_to_ptr.hbm [resolvable:$true] %s651_s30 }
 0x1e0   : > { %s1088_s25 = sshra.s32 %s652_s30, 4  ;;  %s1089_s25 = int_to_ptr.hbm [resolvable:$true] %s1088_s25 }
 0x1e1   : > { %s1090_s12 = scalar_lea.hbm %s1089_s25, 8  ;;  %p1095_p8 = scmp.lt.s32.totalorder %s1089_s25, %s1456_s10 }
 0x1e2   : > { %p1091_p3 = scmp.ne.s32.totalorder %s1089_s25, %s1090_s12  ;;  %p1096_p9 = scmp.lt.s32.totalorder %s1094_s26, %s1090_s12 }
 0x1e4   : > { %p1092_p4 = pnand %p1091_p3, %p1292_p5  ;;  %p1097_p10 = por %p1096_p9, %p1095_p8 }
 0x1e6   : > { %p1093_p7 = pneg %p1092_p4 }
 0x1e8   : > { %p1098_p11 = pnand %p1097_p10, %p1093_p7 }
 0x1ea   : > { %1101 = shalt.err (!%p1098_p11)
}
 0x1eb   : > { %836 = dma.vmem_to_hbm [thread:$0]  (%p1292_p5), %s650_s15, 128, %s652_s30, %s637_s14  }
 0x1ec   : > { %s1189_s1 = smov [#allocation13]   ;;  %s662_s24 = sshll.u32 %s1457_s11, 4  ;;  %s663_s24 = int_to_ptr.hbm [resolvable:$true] %s662_s24 }
 0x1ed   : > { %s660_s5 = sshll.u32 %s1189_s1, 4  ;;  %s1190_s13 = smov 128   ;;  %s661_s5 = int_to_ptr.vmem [resolvable:$true] %s660_s5 }
 0x1ee   : > { %s1191_s2 = smov 8  }
 0x1ef   : > { %838 = dma.vmem_to_hbm [thread:$0]  (%p262_p2), %s661_s5, 256, %s663_s24, [#allocation14], %s1190_s13, %s1190_s13, %s1191_s2  }
 0x1f0   : > { %1159 = dma.done.wait (%p262_p2), [#allocation14], 256  }
 0x1f1   : > { %1161 = vsyncadd (%p262_p2), [#allocation14], 4294967040 }
 0x1f2 PF: > { %p874_p5 = scmp.ge.s32.totalorder %s1180_s20, 2  ;;  %s682_s15 = sand.u32 1, %s1168_s17  }
 0x1f3   : > { %s683_s30 = scalar_lea.sflag [#allocation5], %s682_s15 }
 0x1f4   : > { %p859_p12 = pnand %p874_p5, %p1296_p6 }
 0x1f6   : > { %p860_p13 = pneg %p859_p12 }
 0x1f8   : > { %1163 = dma.done.wait (%p860_p13), %s683_s30, 128  }
 0x1f9   : > { %1165 = vsyncadd (%p860_p13), %s683_s30, 4294967168  ;;  %s1477_s20 = sld [smem:[#allocation21_spill]]  ;;  %s1480_s17 = smov %s1172_s18 }
 0x1fa   : > { %s1478_s14 = sld [smem:[#allocation20_spill]] }
 0x1fb   : > { %s1479_s19 = sld [smem:[#allocation22_spill]] }
 0x1ff   : > { %p26_p0 = scmp.ge.s32.totalorder %s1477_s20, 10  }
 0x200   : > { %s1481_s18 = smov %s1478_s14 }
 0x201   :  { %28 = sbr.rel (!%p26_p0) target bundleno = 11 (0xb), region = 133 }
 0x206   :  { %689 = vsyncpa [#allocation4], 1 }
 0x207   :  { %691 = vsyncpa [#allocation4 + $0x1], 1 }
 0x208   :  { %692 = vsyncpa [#allocation7], 1 }
 0x209   :  { %693 = vsyncpa [#allocation10], 1 }
 0x20a   :  { %694 = vsyncpa [#allocation5], 1 }
 0x20b   :  { %696 = vsyncpa [#allocation5 + $0x1], 1 }
 0x20c   :  { %697 = vsyncpa [#allocation14], 1 }

</bundles_post_ra>
